<compile_context>
chip_gen: v6e
topology: v6e:2x2x1
jax: 0.10.0
libtpu: 0.0.40
codegen_flags: <defaults>
</compile_context>

<pallas_src>
import jax
import jax.numpy as jnp
from jax.experimental import pallas as pl
from jax.experimental.pallas import tpu as pltpu

EPS = 1e-8  # nn.LayerNorm(hidden_size, eps=1e-08) in the original module


def _layernorm_residual(y, x_ref, p_ref):
    """LayerNorm(y) * gamma + beta + x, all in f32. y is fully resident (tb, H)."""
    mean = jnp.mean(y, axis=-1, keepdims=True)
    centered = y - mean                       # centered variance: no catastrophic cancellation
    var = jnp.mean(centered * centered, axis=-1, keepdims=True)
    y_ln = centered * jax.lax.rsqrt(var + EPS)
    y_ln = y_ln * p_ref[1:2, :].astype(jnp.float32) + p_ref[2:3, :].astype(jnp.float32)
    # Dropout: identity at inference time.
    # TODO(synk): training-mode dropout would use pltpu.prng_seed + prng_random_bits.
    return y_ln + x_ref[...].astype(jnp.float32)


def linear_block_kernel_direct(x_ref, w_ref, p_ref, o_ref):
    """f32-output path: o_ref (resident across K via index_map (i, 0)) is the accumulator."""
    k = pl.program_id(1)
    nk = pl.num_programs(1)
    tk = w_ref.shape[0]

    @pl.when(k == 0)
    def _init():
        # Seed with the bias: removes a (tb, H) VPU add from the last-K epilogue.
        o_ref[...] = jnp.broadcast_to(p_ref[0:1, :].astype(jnp.float32), o_ref.shape)

    start = pl.multiple_of(k * tk, tk)
    # Native-dtype MXU pass; f32 accumulate via preferred_element_type (no operand upcast).
    o_ref[...] += jnp.dot(
        x_ref[:, pl.ds(start, tk)], w_ref[...], preferred_element_type=jnp.float32
    )

    @pl.when(k == nk - 1)
    def _finalize():
        o_ref[...] = _layernorm_residual(o_ref[...], x_ref, p_ref)


def linear_block_kernel_acc(x_ref, w_ref, p_ref, o_ref, acc_ref):
    """Generic path (e.g. bf16 outputs): f32 VMEM accumulator, cast on the final store."""
    k = pl.program_id(1)
    nk = pl.num_programs(1)
    tk = w_ref.shape[0]

    @pl.when(k == 0)
    def _init():
        acc_ref[...] = jnp.broadcast_to(p_ref[0:1, :].astype(jnp.float32), acc_ref.shape)

    start = pl.multiple_of(k * tk, tk)
    acc_ref[...] += jnp.dot(
        x_ref[:, pl.ds(start, tk)], w_ref[...], preferred_element_type=jnp.float32
    )

    @pl.when(k == nk - 1)
    def _finalize():
        o_ref[...] = _layernorm_residual(acc_ref[...], x_ref, p_ref).astype(o_ref.dtype)


def _round_up(a, m):
    return ((a + m - 1) // m) * m


def _chip_vmem_bytes():
    """Physical VMEM of the current chip; conservative fallback (v7x = 64 MiB/TC)."""
    try:
        return int(pltpu.get_tpu_info().vmem_capacity_bytes)
    except Exception:
        return 64 << 20


def _pick_tile_b(B):
    """Batch tile: prefer no padding (divisor of B or the full ragged B), keep >=2
    tiles for megacore sharding when B allows, cap at 256 rows."""
    if B < 16:
        return B                      # tiny batch: one full-dim tile, no padding
    if B <= 256:
        half = B // 2
        if half % 8 == 0:             # two tiles -> both TensorCores busy (v7x)
            return half
        return B                      # ragged small batch: one full-dim tile, no padding
    for tb in (256, 128, 192, 64):    # exact tilings first (avoid pad/slice copies)
        if B % tb == 0:
            return tb
    return 256                        # large ragged batch: pad up to 256-row tiles


def _pick_tile_k(H, chip_vmem):
    """K slab: 128-multiples only (lane-aligned in-kernel x slices); smaller slabs
    on 64 MiB-VMEM chips (v7x) to keep double-buffered weights cheap."""
    if H <= 512 or H % 128 != 0:
        return H                      # no K split: slice is the full row, always aligned
    cap = 512 if chip_vmem > (64 << 20) else 256
    for tk in range(cap, 127, -128):
        if H % tk == 0:
            return tk
    return 128


def pack_params(w, b, gamma, beta):
    """One-time parameter preprocessing (hoisted out of the per-call path).

    w: (H, H) PyTorch-layout weight (out, in).
    Returns w_t (H, H) in (in, out) layout and params (3, H) = [bias; gamma; beta].
    For large-batch, mem-bound deployments store w_t as bf16 here to halve weight
    HBM traffic (in-kernel accumulation stays f32).
    """
    w_t = jnp.asarray(w).T
    params = jnp.stack([jnp.asarray(b), jnp.asarray(gamma), jnp.asarray(beta)], axis=0)
    return w_t, params


def linear_block(x, w_t, params, *, tile_b=None, tile_k=None):
    """x: (B, H). w_t: (H, H) pre-transposed weight (in, out). params: (3, H)."""
    B, H = x.shape
    chip_vmem = _chip_vmem_bytes()
    tb = tile_b if tile_b is not None else _pick_tile_b(B)
    tk = tile_k if tile_k is not None else _pick_tile_k(H, chip_vmem)
    assert H % tk == 0, "hidden size must be divisible by tile_k"

    # Ragged batch: only pad when tb does not tile B exactly (rare with _pick_tile_b).
    Bp = B if B % tb == 0 else _round_up(B, tb)
    x_in = x if Bp == B else jnp.pad(x, ((0, Bp - B), (0, 0)))

    grid = (Bp // tb, H // tk)
    direct = x.dtype == jnp.float32   # accumulate straight into o_ref when output is f32

    x_item = jnp.dtype(x.dtype).itemsize
    w_item = jnp.dtype(w_t.dtype).itemsize
    vmem_need = (
        2 * tb * H * x_item           # x row tile, double-buffered (resident over K)
        + 2 * tk * H * w_item         # weight K-slab, double-buffered
        + 2 * 3 * H * w_item          # packed params
        + 2 * tb * H * x_item         # output tile
        + (0 if direct else tb * H * 4)  # f32 accumulator scratch (non-f32 outputs only)
    )
    vmem_limit = max(vmem_need + (2 << 20), 16 << 20)
    vmem_limit = min(vmem_limit, chip_vmem - (8 << 20))   # never exceed physical VMEM

    cost = pl.CostEstimate(
        flops=2 * Bp * H * H,
        transcendentals=0,
        bytes_accessed=int((Bp // tb) * H * H * w_item + 2 * Bp * H * x_item + 3 * H * w_item),
    )

    kernel = linear_block_kernel_direct if direct else linear_block_kernel_acc
    scratch = [] if direct else [pltpu.VMEM((tb, H), jnp.float32)]

    out = pl.pallas_call(
        kernel,
        out_shape=jax.ShapeDtypeStruct((Bp, H), x.dtype),
        grid_spec=pltpu.PrefetchScalarGridSpec(
            num_scalar_prefetch=0,
            grid=grid,
            in_specs=[
                pl.BlockSpec((tb, H), lambda i, k: (i, 0)),   # x row tile, resident over K
                pl.BlockSpec((tk, H), lambda i, k: (k, 0)),   # weight K-slab (in, out layout)
                pl.BlockSpec((3, H), lambda i, k: (0, 0)),    # packed bias/gamma/beta
            ],
            out_specs=pl.BlockSpec((tb, H), lambda i, k: (i, 0)),
            scratch_shapes=scratch,
        ),
        compiler_params=pltpu.CompilerParams(
            dimension_semantics=("parallel", "arbitrary"),
            vmem_limit_bytes=int(vmem_limit),
        ),
        cost_estimate=cost,
    )(x_in, w_t, params)

    return out if Bp == B else out[:B]


def linear_block_ref(x, w, b, gamma, beta):
    """Pure-JAX reference matching the PyTorch module (eval mode)."""
    y = x @ w.T + b
    mean = jnp.mean(y, axis=-1, keepdims=True)
    var = jnp.mean((y - mean) ** 2, axis=-1, keepdims=True)
    y_ln = (y - mean) / jnp.sqrt(var + EPS) * gamma + beta
    return y_ln + x


if __name__ == "__main__":
    key = jax.random.PRNGKey(0)
    B, H = 20, 128  # batch (non-multiple of 8 to exercise ragged handling), hidden_size

    k_x, k_w, k_b = jax.random.split(key, 3)
    x = jax.random.normal(k_x, (B, H), dtype=jnp.float32)
    # Deterministic synthetic parameters (mimics nn.Linear's uniform init range).
    bound = 1.0 / jnp.sqrt(H)
    w = jax.random.uniform(k_w, (H, H), minval=-bound, maxval=bound, dtype=jnp.float32)
    b = jax.random.uniform(k_b, (H,), minval=-bound, maxval=bound, dtype=jnp.float32)
    gamma = jnp.ones((H,), dtype=jnp.float32)   # nn.LayerNorm default weight
    beta = jnp.zeros((H,), dtype=jnp.float32)   # nn.LayerNorm default bias

    # One-time parameter prep (hoisted out of the per-call path).
    w_t, params = pack_params(w, b, gamma, beta)

    out = jax.block_until_ready(linear_block(x, w_t, params))

    ref = linear_block_ref(x, w, b, gamma, beta)
    assert out.shape == ref.shape, "shape mismatch vs reference"
    assert jnp.allclose(out, ref, atol=1e-4, rtol=1e-4), "mismatch vs reference"

    print("KERNEL_OK")
</pallas_src>

<mosaic_0001>
module attributes {stable_mosaic.version = 11 : i64} {
  func.func @linear_block_kernel_direct(%arg0: i32, %arg1: i32, %arg2: memref<20x128xf32, #tpu.memory_space<vmem>>, %arg3: memref<128x128xf32, #tpu.memory_space<vmem>>, %arg4: memref<3x128xf32, #tpu.memory_space<vmem>>, %arg5: memref<20x128xf32, #tpu.memory_space<vmem>>) attributes {dimension_semantics = [#tpu.dimension_semantics<parallel>, #tpu.dimension_semantics<arbitrary>], iteration_bounds = array<i64: 1, 1>, scalar_prefetch = 0 : i64, scratch_operands = 0 : i64, tpu.core_type = #tpu.core_type<tc>, window_params = [{transform_indices = @transform_0, window_bounds = array<i64: 20, 128>}, {transform_indices = @transform_1, window_bounds = array<i64: 128, 128>}, {pipeline_mode = #tpu.pipeline_mode<synchronous>, transform_indices = @transform_2, window_bounds = array<i64: 3, 128>}, {transform_indices = @transform_3, window_bounds = array<i64: 20, 128>}]} {
    %c0_i32 = arith.constant 0 : i32
    %0 = arith.cmpi eq, %arg1, %c0_i32 : i32
    %1 = arith.extui %0 : i1 to i32
    %c0_i32_0 = arith.constant 0 : i32
    %2 = arith.cmpi ne, %1, %c0_i32_0 : i32
    scf.if %2 {
      %c0_9 = arith.constant 0 : index
      %c0_10 = arith.constant 0 : index
      %15 = vector.load %arg4[%c0_9, %c0_10] : memref<3x128xf32, #tpu.memory_space<vmem>>, vector<1x128xf32>
      %16 = vector.shape_cast %15 : vector<1x128xf32> to vector<1x128xf32>
      %17 = vector.broadcast %16 : vector<1x128xf32> to vector<20x128xf32>
      %c0_11 = arith.constant 0 : index
      %c0_12 = arith.constant 0 : index
      %18 = vector.load %arg5[%c0_11, %c0_12] : memref<20x128xf32, #tpu.memory_space<vmem>>, vector<20x128xf32>
      tpu.vector_store %arg5[%c0_11, %c0_12], %17 {strides = array<i32>} : memref<20x128xf32, #tpu.memory_space<vmem>>, vector<20x128xf32>,
    } else {
    }
    %c128_i32 = arith.constant 128 : i32
    %3 = arith.muli %arg1, %c128_i32 : i32
    %4 = tpu.assume_multiple %3, 128 : i32
    %c0 = arith.constant 0 : index
    %c0_1 = arith.constant 0 : index
    %5 = vector.load %arg5[%c0, %c0_1] : memref<20x128xf32, #tpu.memory_space<vmem>>, vector<20x128xf32>
    %c0_2 = arith.constant 0 : index
    %6 = arith.index_cast %4 : i32 to index
    %7 = vector.load %arg2[%c0_2, %6] : memref<20x128xf32, #tpu.memory_space<vmem>>, vector<20x128xf32>
    %c0_3 = arith.constant 0 : index
    %c0_4 = arith.constant 0 : index
    %8 = vector.load %arg3[%c0_3, %c0_4] : memref<128x128xf32, #tpu.memory_space<vmem>>, vector<128x128xf32>
    %cst = arith.constant dense<0.000000e+00> : vector<20x128xf32>
    %9 = tpu.matmul %7, %8, %cst {dimension_numbers = #tpu.dot_dimension_numbers<[1], [0], [0], [1], [0, 0, 1, 1], [], []>} : vector<20x128xf32>, vector<128x128xf32>, vector<20x128xf32> -> vector<20x128xf32>
    %10 = arith.addf %5, %9 : vector<20x128xf32>
    %c0_5 = arith.constant 0 : index
    %c0_6 = arith.constant 0 : index
    %11 = vector.load %arg5[%c0_5, %c0_6] : memref<20x128xf32, #tpu.memory_space<vmem>>, vector<20x128xf32>
    tpu.vector_store %arg5[%c0_5, %c0_6], %10 {strides = array<i32>} : memref<20x128xf32, #tpu.memory_space<vmem>>, vector<20x128xf32>,
    %c0_i32_7 = arith.constant 0 : i32
    %12 = arith.cmpi eq, %arg1, %c0_i32_7 : i32
    %13 = arith.extui %12 : i1 to i32
    %c0_i32_8 = arith.constant 0 : i32
    %14 = arith.cmpi ne, %13, %c0_i32_8 : i32
    scf.if %14 {
      %c0_9 = arith.constant 0 : index
      %c0_10 = arith.constant 0 : index
      %15 = vector.load %arg5[%c0_9, %c0_10] : memref<20x128xf32, #tpu.memory_space<vmem>>, vector<20x128xf32>
      %cst_11 = arith.constant dense<0.000000e+00> : vector<20xf32>
      %16 = vector.multi_reduction <add>, %15, %cst_11 [1] : vector<20x128xf32> to vector<20xf32>
      %17 = vector.shape_cast %16 : vector<20xf32> to vector<20x1xf32>
      %cst_12 = arith.constant 1.280000e+02 : f32
      %18 = vector.broadcast %cst_12 : f32 to vector<20x1xf32>
      %19 = arith.divf %17, %18 : vector<20x1xf32>
      %20 = vector.broadcast %19 : vector<20x1xf32> to vector<20x128xf32>
      %21 = arith.subf %15, %20 : vector<20x128xf32>
      %22 = arith.mulf %21, %21 : vector<20x128xf32>
      %cst_13 = arith.constant dense<0.000000e+00> : vector<20xf32>
      %23 = vector.multi_reduction <add>, %22, %cst_13 [1] : vector<20x128xf32> to vector<20xf32>
      %24 = vector.shape_cast %23 : vector<20xf32> to vector<20x1xf32>
      %cst_14 = arith.constant 1.280000e+02 : f32
      %25 = vector.broadcast %cst_14 : f32 to vector<20x1xf32>
      %26 = arith.divf %24, %25 : vector<20x1xf32>
      %cst_15 = arith.constant 9.99999993E-9 : f32
      %27 = vector.broadcast %cst_15 : f32 to vector<20x1xf32>
      %28 = arith.addf %26, %27 : vector<20x1xf32>
      %29 = math.rsqrt %28 : vector<20x1xf32>
      %30 = vector.broadcast %29 : vector<20x1xf32> to vector<20x128xf32>
      %31 = arith.mulf %21, %30 : vector<20x128xf32>
      %c1 = arith.constant 1 : index
      %c0_16 = arith.constant 0 : index
      %32 = vector.load %arg4[%c1, %c0_16] : memref<3x128xf32, #tpu.memory_space<vmem>>, vector<1x128xf32>
      %33 = vector.broadcast %32 : vector<1x128xf32> to vector<20x128xf32>
      %34 = arith.mulf %31, %33 : vector<20x128xf32>
      %c2 = arith.constant 2 : index
      %c0_17 = arith.constant 0 : index
      %35 = vector.load %arg4[%c2, %c0_17] : memref<3x128xf32, #tpu.memory_space<vmem>>, vector<1x128xf32>
      %36 = vector.broadcast %35 : vector<1x128xf32> to vector<20x128xf32>
      %37 = arith.addf %34, %36 : vector<20x128xf32>
      %c0_18 = arith.constant 0 : index
      %c0_19 = arith.constant 0 : index
      %38 = vector.load %arg2[%c0_18, %c0_19] : memref<20x128xf32, #tpu.memory_space<vmem>>, vector<20x128xf32>
      %39 = arith.addf %37, %38 : vector<20x128xf32>
      %c0_20 = arith.constant 0 : index
      %c0_21 = arith.constant 0 : index
      %40 = vector.load %arg5[%c0_20, %c0_21] : memref<20x128xf32, #tpu.memory_space<vmem>>, vector<20x128xf32>
      tpu.vector_store %arg5[%c0_20, %c0_21], %39 {strides = array<i32>} : memref<20x128xf32, #tpu.memory_space<vmem>>, vector<20x128xf32>,
    } else {
    }
    return
  }
  func.func @transform_0(%arg0: i32, %arg1: i32) -> (i32, i32) {
    %c0_i32 = arith.constant 0 : i32
    %c0_i32_0 = arith.constant 0 : i32
    return %arg0, %c0_i32 : i32, i32
  }
  func.func @transform_1(%arg0: i32, %arg1: i32) -> (i32, i32) {
    %c0_i32 = arith.constant 0 : i32
    %c0_i32_0 = arith.constant 0 : i32
    return %arg1, %c0_i32 : i32, i32
  }
  func.func @transform_2(%arg0: i32, %arg1: i32) -> (i32, i32) {
    %c0_i32 = arith.constant 0 : i32
    %c0_i32_0 = arith.constant 0 : i32
    %c0_i32_1 = arith.constant 0 : i32
    return %c0_i32, %c0_i32_0 : i32, i32
  }
  func.func @transform_3(%arg0: i32, %arg1: i32) -> (i32, i32) {
    %c0_i32 = arith.constant 0 : i32
    %c0_i32_0 = arith.constant 0 : i32
    return %arg0, %c0_i32 : i32, i32
  }
}

</mosaic_0001>

<bundles_post_ra>
// kernel: tpu_custom_call.1
= control target key start
LH: loop header
LB: loop body
LE: loop exit
PB: predicated region body
PF: predicated region fallthrough
CT: control target
= control target key end

     0   :  { %8 = vsyncpa [#allocation3], 0  ;;  %s558_s0 = inlined_call_operand.hbm [shape: f32[20,128], index: 0, kind: input, shape index: {}]   ;;  %s559_s1 = inlined_call_operand.hbm [shape: f32[128,128], index: 1, kind: input, shape index: {}]   ;;  %s560_s2 = inlined_call_operand.hbm [shape: f32[3,128], index: 2, kind: input, shape index: {}]   ;;  %s561_s3 = inlined_call_operand.hbm [shape: f32[20,128], index: 3, kind: output, shape index: {}]  }
   0x1   :  { %9 = vsyncpa [#allocation6], 0 }
   0x2   :  { %10 = vsyncpa [#allocation4], 0  ;;  %s460_s12 = smov [#allocation5]   ;;  %s461_s14 = smov [#allocation2]  }
   0x3   :  { %s28_s13 = sshll.u32 %s460_s12, 4  ;;  %s16_s15 = sshll.u32 %s461_s14, 4  ;;  %s29_s13 = int_to_ptr.vmem [resolvable:$true] %s28_s13  ;;  %s17_s15 = int_to_ptr.vmem [resolvable:$true] %s16_s15 }
   0x4   :  { %s382_s16 = scalar_lea.vmem %s29_s13, 2048  ;;  %p387_p1 = scmp.lt.s32.totalorder %s29_s13, %s29_s13 }
   0x5   :  { %p383_p0 = scmp.ne.s32.totalorder %s29_s13, %s382_s16  ;;  %p388_p2 = scmp.lt.s32.totalorder %s382_s16, %s382_s16 }
   0x7   :  { %p389_p3 = por %p388_p2, %p387_p1 }
   0x9   :  { %p390_p4 = pnand %p389_p3, %p383_p0 }
   0xb   :  { %393 = shalt.err (!%p390_p4)
}
   0xc   :  { %s462_s17 = smov 128   ;;  %s463_s18 = smov 8  }
   0xd   :  { %34 = dma.hbm_to_vmem [thread:$0]  %s559_s1, 2048, %s29_s13, [#allocation6], %s462_s17, %s462_s17, %s463_s18  }
   0xe   :  { %s402_s21 = scalar_lea.vmem %s17_s15, 384  ;;  %p407_p6 = scmp.lt.s32.totalorder %s17_s15, %s17_s15 }
   0xf   :  { %p403_p5 = scmp.ne.s32.totalorder %s17_s15, %s402_s21  ;;  %p408_p7 = scmp.lt.s32.totalorder %s402_s21, %s402_s21 }
  0x11   :  { %p409_p8 = por %p408_p7, %p407_p6 }
  0x13   :  { %p410_p9 = pnand %p409_p8, %p403_p5 }
  0x15   :  { %413 = shalt.err (!%p410_p9)
}
  0x16   :  { %22 = dma.hbm_to_vmem [thread:$0]  %s558_s0, 384, %s17_s15, [#allocation3], %s462_s17, %s462_s17, %s463_s18  }
  0x17   :  { %s464_s24 = smov [#allocation7]  }
  0x18   :  { %s41_s25 = sshll.u32 %s464_s24, 4  ;;  %s42_s25 = int_to_ptr.vmem [resolvable:$true] %s41_s25 }
  0x19   :  { %s422_s26 = scalar_lea.vmem %s42_s25, 64  ;;  %p427_p11 = scmp.lt.s32.totalorder %s42_s25, %s42_s25 }
  0x1a   :  { %p423_p10 = scmp.ne.s32.totalorder %s42_s25, %s422_s26  ;;  %p428_p12 = scmp.lt.s32.totalorder %s422_s26, %s422_s26 }
  0x1c   :  { %p429_p13 = por %p428_p12, %p427_p11 }
  0x1e   :  { %p430_p0 = pnand %p429_p13, %p423_p10 }
  0x20   :  { %433 = shalt.err (!%p430_p0)
}
  0x21   :  { %44 = dma.hbm_to_vmem [thread:$0]  %s560_s2, 64, %s42_s25, [#allocation6]  }
  0x22   :  { %454 = dma.done.wait [#allocation3], 384  }
  0x23   :  { %455 = vsyncadd [#allocation3], 4294966912 }
  0x24   :  { %456 = dma.done.wait [#allocation6], 2112  }
  0x25   :  { %457 = vsyncadd [#allocation6], 4294965184  ;;  %v465_v0 = vmov 0.0   ;;  %vm466_vm0 = vmmov 0   ;;  %v91_v1 = vld [vmem:[#allocation5 + $0x78] sm:$0xff]  ;;  %v90_v2 = vld [vmem:[#allocation5 + $0x70] sm:$0xff] }
  0x26   :  { %328 = vmatprep.subr.mxu1 %v465_v0  ;;  %287 = vmatprep.subr.mxu0 %v465_v0  ;;  %v89_v3 = vld [vmem:[#allocation5 + $0x68] sm:$0xff]  ;;  %v88_v4 = vld [vmem:[#allocation5 + $0x60] sm:$0xff]  ;;  %v87_v5 = vld [vmem:[#allocation5 + $0x58] sm:$0xff]  ;;  %vm188_vm1 = vcmask 1043456   ;;  %s467_s0 = smov [#allocation8]  }
  0x27   :  { %322 = vmatprep.mubr.msk.f32.mxu1 %vm466_vm0, %v465_v0  ;;  %319 = vmatprep.mubr.msk.f32.mxu0 %vm466_vm0, %v465_v0  ;;  %v515_v6 = vld [vmem:[#allocation7] ss:$0 sm:$0xff]  ;;  %v86_v7 = vld [vmem:[#allocation5 + $0x50] sm:$0xff]  ;;  %v85_v8 = vld [vmem:[#allocation5 + $0x48] sm:$0xff]  ;;  %s251_s2 = sshll.u32 %s467_s0, 4  ;;  %s252_s2 = int_to_ptr.vmem [resolvable:$true] %s251_s2 }
  0x28   :  { %344 = vmatpush3.msra.mxu1 %v91_v1  ;;  %288 = vmatpush3.msra.mxu0 %v91_v1  ;;  %65 = vst [vmem:[#allocation8 + $0x10] sm:$0xf] %v515_v6  ;;  %v84_v9 = vld [vmem:[#allocation5 + $0x40] sm:$0xff]  ;;  %v83_v10 = vld [vmem:[#allocation5 + $0x38] sm:$0xff]  ;;  %v82_v11 = vld [vmem:[#allocation5 + $0x30] sm:$0xff]  ;;  %s434_s28 = scalar_lea.vmem %s252_s2, 384  ;;  %p439_p2 = scmp.lt.s32.totalorder %s252_s2, %s252_s2 }
  0x29   :  { %329 = vmatprep.subr.mxu1 %v465_v0  ;;  %289 = vmatprep.subr.mxu0 %v465_v0  ;;  %v81_v12 = vld [vmem:[#allocation5 + $0x28] sm:$0xff]  ;;  %v80_v13 = vld [vmem:[#allocation5 + $0x20] sm:$0xff]  ;;  %v79_v14 = vld [vmem:[#allocation5 + $0x18] sm:$0xff]  ;;  %p435_p1 = scmp.ne.s32.totalorder %s252_s2, %s434_s28  ;;  %p440_p3 = scmp.lt.s32.totalorder %s434_s28, %s434_s28 }
  0x2a   :  { %345 = vmatpush3.msra.mxu1 %v90_v2  ;;  %290 = vmatpush3.msra.mxu0 %v90_v2  ;;  %v78_v15 = vld [vmem:[#allocation5 + $0x10] sm:$0xff]  ;;  %v77_v16 = vld [vmem:[#allocation5 + $0x8] sm:$0xff]  ;;  %v76_v17 = vld [vmem:[#allocation5] sm:$0xff] }
  0x2b   :  { %330 = vmatprep.subr.mxu1 %v465_v0  ;;  %291 = vmatprep.subr.mxu0 %v465_v0  ;;  %v74_v18 = vld [vmem:[#allocation2 + $0x8] sm:$0xff]  ;;  %v540_v19 = vld [vmem:[#allocation2] sm:$0xff]  ;;  %v75_v20 = vld [vmem:[#allocation2 + $0x10] sm:$0xf]  ;;  %p441_p4 = por %p440_p3, %p439_p2 }
  0x2c   :  { %346 = vmatpush3.msra.mxu1 %v89_v3  ;;  %292 = vmatpush3.msra.mxu0 %v89_v3  ;;  %v266_v51 = vld [vmem:[#allocation7 + $0x1] ss:$0 sm:$0xff]  ;;  %v267_v55 = vld [vmem:[#allocation7 + $0x2] ss:$0 sm:$0xff] }
  0x2d   :  { %331 = vmatprep.subr.mxu1 %v465_v0  ;;  %293 = vmatprep.subr.mxu0 %v465_v0  ;;  %p442_p5 = pnand %p441_p4, %p435_p1 }
  0x2e   :  { %347 = vmatpush3.msra.mxu1 %v88_v4  ;;  %294 = vmatpush3.msra.mxu0 %v88_v4 }
  0x2f   :  { %332 = vmatprep.subr.mxu1 %v465_v0  ;;  %295 = vmatprep.subr.mxu0 %v465_v0  ;;  %v69_v25 = vld [vmem:[#allocation8 + $0x10] sm:$0xf] }
  0x30   :  { %348 = vmatpush3.msra.mxu1 %v87_v5  ;;  %296 = vmatpush3.msra.mxu0 %v87_v5 }
  0x31   :  { %333 = vmatprep.subr.mxu1 %v465_v0  ;;  %297 = vmatprep.subr.mxu0 %v465_v0 }
  0x32   :  { %349 = vmatpush3.msra.mxu1 %v86_v7  ;;  %298 = vmatpush3.msra.mxu0 %v86_v7 }
  0x33   :  { %334 = vmatprep.subr.mxu1 %v465_v0  ;;  %299 = vmatprep.subr.mxu0 %v465_v0 }
  0x34   :  { %350 = vmatpush3.msra.mxu1 %v85_v8  ;;  %300 = vmatpush3.msra.mxu0 %v85_v8 }
  0x35   :  { %335 = vmatprep.subr.mxu1 %v465_v0  ;;  %301 = vmatprep.subr.mxu0 %v465_v0 }
  0x36   :  { %351 = vmatpush3.msra.mxu1 %v84_v9  ;;  %302 = vmatpush3.msra.mxu0 %v84_v9 }
  0x37   :  { %336 = vmatprep.subr.mxu1 %v465_v0  ;;  %303 = vmatprep.subr.mxu0 %v465_v0 }
  0x38   :  { %352 = vmatpush3.msra.mxu1 %v83_v10  ;;  %304 = vmatpush3.msra.mxu0 %v83_v10 }
  0x39   :  { %337 = vmatprep.subr.mxu1 %v465_v0  ;;  %305 = vmatprep.subr.mxu0 %v465_v0 }
  0x3a   :  { %353 = vmatpush3.msra.mxu1 %v82_v11  ;;  %306 = vmatpush3.msra.mxu0 %v82_v11 }
  0x3b   :  { %338 = vmatprep.subr.mxu1 %v465_v0  ;;  %307 = vmatprep.subr.mxu0 %v465_v0 }
  0x3c   :  { %354 = vmatpush3.msra.mxu1 %v81_v12  ;;  %308 = vmatpush3.msra.mxu0 %v81_v12 }
  0x3d   :  { %339 = vmatprep.subr.mxu1 %v465_v0  ;;  %309 = vmatprep.subr.mxu0 %v465_v0 }
  0x3e   :  { %355 = vmatpush3.msra.mxu1 %v80_v13  ;;  %310 = vmatpush3.msra.mxu0 %v80_v13 }
  0x3f   :  { %340 = vmatprep.subr.mxu1 %v465_v0  ;;  %311 = vmatprep.subr.mxu0 %v465_v0 }
  0x40   :  { %356 = vmatpush3.msra.mxu1 %v79_v14  ;;  %312 = vmatpush3.msra.mxu0 %v79_v14 }
  0x41   :  { %341 = vmatprep.subr.mxu1 %v465_v0  ;;  %313 = vmatprep.subr.mxu0 %v465_v0 }
  0x42   :  { %357 = vmatpush3.msra.mxu1 %v78_v15  ;;  %314 = vmatpush3.msra.mxu0 %v78_v15 }
  0x43   :  { %342 = vmatprep.subr.mxu1 %v465_v0  ;;  %315 = vmatprep.subr.mxu0 %v465_v0 }
  0x44   :  { %358 = vmatpush3.msra.mxu1 %v77_v16  ;;  %316 = vmatpush3.msra.mxu0 %v77_v16 }
  0x45   :  { %343 = vmatprep.subr.mxu1 %v465_v0  ;;  %317 = vmatprep.subr.mxu0 %v465_v0 }
  0x46   :  { %359 = vmatpush3.msra.mxu1 %v76_v17  ;;  %318 = vmatpush3.msra.mxu0 %v76_v17 }
  0x47   :  { %323 = vmatmul.mubr.f32.vlgmr.msra.gmra.mxu1 %v74_v18  ;;  %320 = vmatmul.mubr.f32.vlgmr.msra.gmra.mxu0 %v540_v19 }
  0x48   :  { %325 = vmatprep.mubr.msk.f32.mxu1 %vm466_vm0, %v465_v0 }
  0x4b   :  { %326 = vmatmul.mubr.f32.gmra.mxu1 %v75_v20 }
 0x107   :  { %v163_v21 = vpop.f32.mrf.mxu1  ;;  %v158_v22 = vpop.f32.mrf.mxu0 }
 0x108   :  { %v173_v23 = vadd.f32 %v515_v6, %v163_v21  ;;  %v172_v32 = vadd.f32 %v515_v6, %v158_v22  ;;  %v239_v6 = vld [vmem:[#allocation2 + $0x10] sm:$0xf] }
 0x109   :  { %v324_v24 = vpop.f32.mrf.mxu1  ;;  %v321_v26 = vpop.f32.mrf.mxu0 }
 0x10a   :  { %186 = vadd.xlane.f32.xlu1 %v173_v23 }
 0x10b   :  { %v168_v27 = vpop.f32.mrf.mxu1 }
 0x10c   :  { %v174_v28 = vadd.f32 %v168_v27, %v69_v25 }
 0x10d   :  { %v327_v29 = vpop.f32.mrf.mxu1 }
 0x10e   :  { %177 = vst [vmem:[#allocation8 + $0x10] sm:$0xf] %v174_v28 }
 0x115   :  { %v183_v30 = vld [vmem:[#allocation8 + $0x10] sm:$0xf] }
 0x116   :  { %v189_v31 = vsel %vm188_vm1, %v183_v30, 0.0 }
 0x117   :  { %190 = vadd.xlane.f32.xlu0 %v189_v31 }
 0x11b   :  { %184 = vadd.xlane.f32.xlu0 %v172_v32 }
 0x193   :  { %v187_v33 = vpop.xlane.xlu1 %186 }
 0x194   :  { %v194_v34 = vmul.f32 0.0078125, %v187_v33 }
 0x196   :  { %v197_v35 = vsub.f32 %v173_v23, %v194_v34 }
 0x198   :  { %v200_v36 = vmul.f32 %v197_v35, %v197_v35 }
 0x19a   :  { %204 = vadd.xlane.f32.xlu0 %v200_v36 }
 0x1a0   :  { %v191_v37 = vpop.xlane.xlu0 %190 }
 0x1a1   :  { %v195_v38 = vmul.f32 0.0078125, %v191_v37 }
 0x1a3   :  { %v198_v41 = vsub.f32 %v183_v30, %v195_v38 }
 0x1a4   :  { %v185_v39 = vpop.xlane.xlu0 %184 }
 0x1a5   :  { %v193_v40 = vmul.f32 0.0078125, %v185_v39  ;;  %v201_v44 = vmul.f32 %v198_v41, %v198_v41 }
 0x1a7   :  { %v196_v42 = vsub.f32 %v172_v32, %v193_v40  ;;  %v206_v45 = vsel %vm188_vm1, %v201_v44, 0.0 }
 0x1a9   :  { %v199_v43 = vmul.f32 %v196_v42, %v196_v42 }
 0x1ab   :  { %202 = vadd.xlane.f32.xlu1 %v199_v43 }
 0x1af   :  { %207 = vadd.xlane.f32.xlu1 %v206_v45 }
 0x223   :  { %v205_v46 = vpop.xlane.xlu0 %204 }
 0x224   :  { %v210_v47 = vmul.f32 0.0078125, %v205_v46 }
 0x226   :  { %v213_v48 = vadd.f32 1e-08, %v210_v47 }
 0x228   :  { %368 = vrsqrt.f32 %v213_v48 }
 0x234   :  { %v203_v49 = vpop.xlane.xlu1 %202 }
 0x235   :  { %v369_v50 = vpop.eup %368  ;;  %v209_v52 = vmul.f32 0.0078125, %v203_v49 }
 0x236   :  { %v219_v53 = vmul.f32 %v369_v50, %v197_v35 }
 0x237   :  { %v212_v54 = vadd.f32 1e-08, %v209_v52 }
 0x238   :  { %v227_v56 = vmul.f32 %v266_v51, %v219_v53  ;;  %v208_v57 = vpop.xlane.xlu1 %207 }
 0x239   :  { %370 = vrsqrt.f32 %v212_v54  ;;  %v211_v58 = vmul.f32 0.0078125, %v208_v57 }
 0x23a   :  { %v235_v59 = vadd.f32 %v267_v55, %v227_v56 }
 0x23b   :  { %v214_v60 = vadd.f32 1e-08, %v211_v58 }
 0x23c   :  { %v241_v61 = vadd.f32 %v235_v59, %v74_v18 }
 0x23d   :  { %372 = vrsqrt.f32 %v214_v60 }
 0x23e   :  { %244 = vst [vmem:[#allocation8 + $0x8] sm:$0xff] %v241_v61 }
 0x246   :  { %v371_v62 = vpop.eup %370 }
 0x247   :  { %v218_v63 = vmul.f32 %v371_v62, %v196_v42 }
 0x249   :  { %v226_v0 = vmul.f32 %v266_v51, %v218_v63 }
 0x24a   :  { %v373_v1 = vpop.eup %372 }
 0x24b   :  { %v220_v2 = vmul.f32 %v373_v1, %v198_v41  ;;  %v234_v3 = vadd.f32 %v267_v55, %v226_v0 }
 0x24d   :  { %v228_v4 = vmul.f32 %v266_v51, %v220_v2  ;;  %v240_v5 = vadd.f32 %v234_v3, %v540_v19 }
 0x24f   :  { %v236_v7 = vadd.f32 %v267_v55, %v228_v4  ;;  %243 = vst [vmem:[#allocation8] sm:$0xff] %v240_v5 }
 0x251   :  { %v242_v8 = vadd.f32 %v239_v6, %v236_v7 }
 0x253   :  { %245 = vst [vmem:[#allocation8 + $0x10] sm:$0xf] %v242_v8 }
 0x254   :  { %445 = shalt.err (!%p442_p5)
}
 0x255   :  { %257 = dma.vmem_to_hbm [thread:$0]  %s252_s2, 384, %s561_s3, [#allocation4], %s462_s17, %s462_s17, %s463_s18  }
 0x256   :  { %458 = dma.done.wait [#allocation4], 384  }
 0x257   :  { %459 = vsyncadd [#allocation4], 4294966912 }
 0x258   :  { %261 = vsyncpa [#allocation3], 1 }
 0x259   :  { %262 = vsyncpa [#allocation6], 1 }
 0x25a   :  { %263 = vsyncpa [#allocation4], 1 }

</bundles_post_ra>
